<compile_context>
chip_gen: v5e
topology: v5e:2x2
jax: 0.10.0
libtpu: 0.0.40
codegen_flags: <defaults>
</compile_context>

<pallas_src>
import jax
import jax.numpy as jnp
from jax.experimental import pallas as pl
from jax.experimental.pallas import tpu as pltpu


def _leaky_relu(x, slope=0.2):
    return jnp.where(x > 0, x, slope * x)


def _round_up(v, m):
    return pl.cdiv(v, m) * m


def disc_kernel(x_ref, w1_ref, b1_ref, w2_ref, b2_ref, w3_ref, b3_ref, o_ref):
    # Upcast the (possibly bf16) input stream right away; all elementwise math
    # stays in f32 so v5e's VPU/EUP (no bf16 path) never see bf16 work.
    x = x_ref[...].astype(jnp.float32)

    h1 = jnp.dot(x, w1_ref[...], preferred_element_type=jnp.float32) + b1_ref[...]
    h1 = _leaky_relu(h1)

    h2 = jnp.dot(h1, w2_ref[...], preferred_element_type=jnp.float32) + b2_ref[...]
    h2 = _leaky_relu(h2)

    # Final (H2 -> 1) layer as VPU multiply + lane reduction (XLU) — avoids a
    # 1-wide MXU matmul and yields a lane-dense (1, tile_n) row for the store.
    h3 = jnp.sum(h2 * w3_ref[...], axis=-1)                  # (tile_n,)
    o_ref[...] = jax.nn.sigmoid(h3[None, :] + b3_ref[...])   # (1, tile_n)


def _vmem_estimate(tile_n, C, H1p, H2p, stream_itemsize):
    x_tile = tile_n * C * stream_itemsize
    out_tile = tile_n * 4
    weights = (C * H1p + H1p + H1p * H2p + 2 * H2p + 1) * 4
    inter = tile_n * (H1p + H2p) * 4          # live h1 / h2 intermediates
    return 2 * (x_tile + out_tile) + 2 * weights + inter


def _pick_tiling(N, C, H1p, H2p, stream_itemsize, cap=1024, budget=40 << 20):
    n128 = _round_up(N, 128)
    tile = min(_round_up(cap, 128), n128)
    # Shrink until the double-buffered working set fits the VMEM budget.
    while tile > 128 and _vmem_estimate(tile, C, H1p, H2p, stream_itemsize) > budget:
        tile -= 128
    # Keep >= 2 grid steps when there is enough work so both v7x TensorCores
    # get a share of the "parallel" grid axis.
    if n128 // tile < 2 and n128 >= 256:
        tile = _round_up(n128 // 2, 128)
    n_pad = _round_up(N, tile)
    return tile, n_pad


def discriminator_forward(x, params, *, tile_n=None, stream_dtype=jnp.bfloat16):
    """x: (N, C) float32. Returns (N,) float32 validity scores."""
    w1, b1, w2, b2, w3, b3 = params
    N, C = x.shape
    H1, H2 = w1.shape[1], w2.shape[1]

    # Pad hidden dims to full lane width (weights are tiny and stay resident).
    H1p = _round_up(max(H1, 1), 128)
    H2p = _round_up(max(H2, 1), 128)

    itemsize = jnp.dtype(stream_dtype).itemsize
    if tile_n is None:
        tile_n, N_pad = _pick_tiling(N, C, H1p, H2p, itemsize)
    else:
        tile_n = int(_round_up(max(tile_n, 128), 128))
        N_pad = int(_round_up(N, tile_n))
    grid_n = N_pad // tile_n

    # Zero-pad parameters (padded lanes provably contribute 0 to real outputs).
    w1p = jnp.pad(w1.astype(jnp.float32), ((0, 0), (0, H1p - H1)))
    b1p = jnp.pad(b1.astype(jnp.float32).reshape(1, H1), ((0, 0), (0, H1p - H1)))
    w2p = jnp.pad(w2.astype(jnp.float32), ((0, H1p - H1), (0, H2p - H2)))
    b2p = jnp.pad(b2.astype(jnp.float32).reshape(1, H2), ((0, 0), (0, H2p - H2)))
    w3r = jnp.pad(w3.astype(jnp.float32).reshape(H2, 1).T, ((0, 0), (0, H2p - H2)))
    b3r = b3.astype(jnp.float32).reshape(1, 1)

    # Pad the batch and stream it as bf16 (halves the dominant HBM traffic).
    xp = jnp.pad(x, ((0, N_pad - N), (0, 0))).astype(stream_dtype)

    vmem_bytes = _vmem_estimate(tile_n, C, H1p, H2p, itemsize) + (8 << 20)
    vmem_bytes = int(min(max(vmem_bytes, 16 << 20), 48 << 20))

    out = pl.pallas_call(
        disc_kernel,
        out_shape=jax.ShapeDtypeStruct((1, N_pad), jnp.float32),
        grid_spec=pltpu.PrefetchScalarGridSpec(
            num_scalar_prefetch=0,
            grid=(grid_n,),
            in_specs=[
                pl.BlockSpec((tile_n, C), lambda i: (i, 0)),   # x tile (bf16)
                pl.BlockSpec((C, H1p), lambda i: (0, 0)),      # W1 (resident)
                pl.BlockSpec((1, H1p), lambda i: (0, 0)),      # b1
                pl.BlockSpec((H1p, H2p), lambda i: (0, 0)),    # W2 (resident)
                pl.BlockSpec((1, H2p), lambda i: (0, 0)),      # b2
                pl.BlockSpec((1, H2p), lambda i: (0, 0)),      # W3 as a row
                pl.BlockSpec((1, 1), lambda i: (0, 0)),        # b3
            ],
            out_specs=pl.BlockSpec((1, tile_n), lambda i: (0, i)),  # lane-dense
        ),
        compiler_params=pltpu.CompilerParams(
            dimension_semantics=("parallel",),
            vmem_limit_bytes=vmem_bytes,
        ),
    )(xp, w1p, b1p, w2p, b2p, w3r, b3r)

    return out.reshape(-1)[:N]  # .view(-1), drop batch padding


def init_params(key, channels):
    """Deterministic PyTorch-style (uniform +/- 1/sqrt(fan_in)) init."""
    h1, h2 = channels // 2, channels // 4
    ks = jax.random.split(key, 6)

    def lin(kw, kb, fan_in, fan_out):
        bound = 1.0 / jnp.sqrt(fan_in)
        w = jax.random.uniform(kw, (fan_in, fan_out), jnp.float32, -bound, bound)
        b = jax.random.uniform(kb, (1, fan_out), jnp.float32, -bound, bound)
        return w, b

    w1, b1 = lin(ks[0], ks[1], channels, h1)
    w2, b2 = lin(ks[2], ks[3], h1, h2)
    w3, b3 = lin(ks[4], ks[5], h2, 1)
    return (w1, b1, w2, b2, w3, b3)


def reference_forward(x, params):
    w1, b1, w2, b2, w3, b3 = params
    h = x @ w1 + b1
    h = jnp.where(h > 0, h, 0.2 * h)
    h = h @ w2 + b2
    h = jnp.where(h > 0, h, 0.2 * h)
    return jax.nn.sigmoid(h @ w3 + b3).reshape(-1)


if __name__ == "__main__":
    key = jax.random.PRNGKey(0)
    k_x, k_p = jax.random.split(key)

    batch, channels = 16, 32  # args.channels -> 32 (small synthetic config)
    x = jax.random.normal(k_x, (batch, channels), jnp.float32)
    params = init_params(k_p, channels)

    y = discriminator_forward(x, params)
    y = jax.block_until_ready(y)

    # Reference consumes the same bf16-rounded input stream as the kernel.
    x_stream = x.astype(jnp.bfloat16).astype(jnp.float32)
    y_ref = reference_forward(x_stream, params)

    assert y.shape == (batch,)
    # Tolerance covers MXU vs XLA matmul pass differences (compute is f32).
    assert jnp.allclose(y, y_ref, atol=1e-3, rtol=1e-3), float(jnp.max(jnp.abs(y - y_ref)))

    print("KERNEL_OK")
</pallas_src>

<mosaic_0001>
module attributes {stable_mosaic.version = 11 : i64} {
  func.func @disc_kernel(%arg0: i32, %arg1: memref<128x32xbf16, #tpu.memory_space<vmem>>, %arg2: memref<32x128xf32, #tpu.memory_space<vmem>>, %arg3: memref<1x128xf32, #tpu.memory_space<vmem>>, %arg4: memref<128x128xf32, #tpu.memory_space<vmem>>, %arg5: memref<1x128xf32, #tpu.memory_space<vmem>>, %arg6: memref<1x128xf32, #tpu.memory_space<vmem>>, %arg7: memref<1x1xf32, #tpu.memory_space<vmem>>, %arg8: memref<1x128xf32, #tpu.memory_space<vmem>>) attributes {dimension_semantics = [#tpu.dimension_semantics<parallel>], iteration_bounds = array<i64: 1>, scalar_prefetch = 0 : i64, scratch_operands = 0 : i64, tpu.core_type = #tpu.core_type<tc>, window_params = [{transform_indices = @transform_0, window_bounds = array<i64: 128, 32>}, {pipeline_mode = #tpu.pipeline_mode<synchronous>, transform_indices = @transform_1, window_bounds = array<i64: 32, 128>}, {pipeline_mode = #tpu.pipeline_mode<synchronous>, transform_indices = @transform_2, window_bounds = array<i64: 1, 128>}, {pipeline_mode = #tpu.pipeline_mode<synchronous>, transform_indices = @transform_3, window_bounds = array<i64: 128, 128>}, {pipeline_mode = #tpu.pipeline_mode<synchronous>, transform_indices = @transform_4, window_bounds = array<i64: 1, 128>}, {pipeline_mode = #tpu.pipeline_mode<synchronous>, transform_indices = @transform_5, window_bounds = array<i64: 1, 128>}, {pipeline_mode = #tpu.pipeline_mode<synchronous>, transform_indices = @transform_6, window_bounds = array<i64: 1, 1>}, {transform_indices = @transform_7, window_bounds = array<i64: 1, 128>}]} {
    %c0 = arith.constant 0 : index
    %c0_0 = arith.constant 0 : index
    %0 = vector.load %arg1[%c0, %c0_0] : memref<128x32xbf16, #tpu.memory_space<vmem>>, vector<128x32xbf16>
    %1 = arith.extf %0 : vector<128x32xbf16> to vector<128x32xf32>
    %c0_1 = arith.constant 0 : index
    %c0_2 = arith.constant 0 : index
    %2 = vector.load %arg2[%c0_1, %c0_2] : memref<32x128xf32, #tpu.memory_space<vmem>>, vector<32x128xf32>
    %cst = arith.constant dense<0.000000e+00> : vector<128x128xf32>
    %3 = tpu.matmul %1, %2, %cst {dimension_numbers = #tpu.dot_dimension_numbers<[1], [0], [0], [1], [0, 0, 1, 1], [], []>} : vector<128x32xf32>, vector<32x128xf32>, vector<128x128xf32> -> vector<128x128xf32>
    %c0_3 = arith.constant 0 : index
    %c0_4 = arith.constant 0 : index
    %4 = vector.load %arg3[%c0_3, %c0_4] : memref<1x128xf32, #tpu.memory_space<vmem>>, vector<1x128xf32>
    %5 = vector.broadcast %4 : vector<1x128xf32> to vector<128x128xf32>
    %6 = arith.addf %3, %5 : vector<128x128xf32>
    %cst_5 = arith.constant 0.000000e+00 : f32
    %7 = vector.broadcast %cst_5 : f32 to vector<128x128xf32>
    %8 = arith.cmpf ogt, %6, %7 : vector<128x128xf32>
    %cst_6 = arith.constant 2.000000e-01 : f32
    %9 = vector.broadcast %cst_6 : f32 to vector<128x128xf32>
    %10 = arith.mulf %9, %6 : vector<128x128xf32>
    %11 = arith.select %8, %6, %10 : vector<128x128xi1>, vector<128x128xf32>
    %c0_7 = arith.constant 0 : index
    %c0_8 = arith.constant 0 : index
    %12 = vector.load %arg4[%c0_7, %c0_8] : memref<128x128xf32, #tpu.memory_space<vmem>>, vector<128x128xf32>
    %cst_9 = arith.constant dense<0.000000e+00> : vector<128x128xf32>
    %13 = tpu.matmul %11, %12, %cst_9 {dimension_numbers = #tpu.dot_dimension_numbers<[1], [0], [0], [1], [0, 0, 1, 1], [], []>} : vector<128x128xf32>, vector<128x128xf32>, vector<128x128xf32> -> vector<128x128xf32>
    %c0_10 = arith.constant 0 : index
    %c0_11 = arith.constant 0 : index
    %14 = vector.load %arg5[%c0_10, %c0_11] : memref<1x128xf32, #tpu.memory_space<vmem>>, vector<1x128xf32>
    %15 = vector.broadcast %14 : vector<1x128xf32> to vector<128x128xf32>
    %16 = arith.addf %13, %15 : vector<128x128xf32>
    %cst_12 = arith.constant 0.000000e+00 : f32
    %17 = vector.broadcast %cst_12 : f32 to vector<128x128xf32>
    %18 = arith.cmpf ogt, %16, %17 : vector<128x128xf32>
    %cst_13 = arith.constant 2.000000e-01 : f32
    %19 = vector.broadcast %cst_13 : f32 to vector<128x128xf32>
    %20 = arith.mulf %19, %16 : vector<128x128xf32>
    %21 = arith.select %18, %16, %20 : vector<128x128xi1>, vector<128x128xf32>
    %c0_14 = arith.constant 0 : index
    %c0_15 = arith.constant 0 : index
    %22 = vector.load %arg6[%c0_14, %c0_15] : memref<1x128xf32, #tpu.memory_space<vmem>>, vector<1x128xf32>
    %23 = vector.broadcast %22 : vector<1x128xf32> to vector<128x128xf32>
    %24 = arith.mulf %21, %23 : vector<128x128xf32>
    %cst_16 = arith.constant dense<0.000000e+00> : vector<128xf32>
    %25 = vector.multi_reduction <add>, %24, %cst_16 [1] : vector<128x128xf32> to vector<128xf32>
    %26 = vector.shape_cast %25 : vector<128xf32> to vector<1x128xf32>
    %c0_17 = arith.constant 0 : index
    %c0_18 = arith.constant 0 : index
    %27 = vector.load %arg7[%c0_17, %c0_18] : memref<1x1xf32, #tpu.memory_space<vmem>>, vector<1x1xf32>
    %28 = vector.broadcast %27 : vector<1x1xf32> to vector<1x128xf32>
    %29 = arith.addf %26, %28 : vector<1x128xf32>
    %30 = arith.negf %29 : vector<1x128xf32>
    %31 = math.exp %30 : vector<1x128xf32>
    %cst_19 = arith.constant 1.000000e+00 : f32
    %32 = vector.broadcast %cst_19 : f32 to vector<1x128xf32>
    %33 = arith.addf %32, %31 : vector<1x128xf32>
    %34 = arith.divf %32, %33 : vector<1x128xf32>
    %c0_20 = arith.constant 0 : index
    %c0_21 = arith.constant 0 : index
    %35 = vector.load %arg8[%c0_20, %c0_21] : memref<1x128xf32, #tpu.memory_space<vmem>>, vector<1x128xf32>
    tpu.vector_store %arg8[%c0_20, %c0_21], %34 {strides = array<i32>} : memref<1x128xf32, #tpu.memory_space<vmem>>, vector<1x128xf32>,
    return
  }
  func.func @transform_0(%arg0: i32) -> (i32, i32) {
    %c0_i32 = arith.constant 0 : i32
    %c0_i32_0 = arith.constant 0 : i32
    return %arg0, %c0_i32 : i32, i32
  }
  func.func @transform_1(%arg0: i32) -> (i32, i32) {
    %c0_i32 = arith.constant 0 : i32
    %c0_i32_0 = arith.constant 0 : i32
    %c0_i32_1 = arith.constant 0 : i32
    return %c0_i32, %c0_i32_0 : i32, i32
  }
  func.func @transform_2(%arg0: i32) -> (i32, i32) {
    %c0_i32 = arith.constant 0 : i32
    %c0_i32_0 = arith.constant 0 : i32
    %c0_i32_1 = arith.constant 0 : i32
    return %c0_i32, %c0_i32_0 : i32, i32
  }
  func.func @transform_3(%arg0: i32) -> (i32, i32) {
    %c0_i32 = arith.constant 0 : i32
    %c0_i32_0 = arith.constant 0 : i32
    %c0_i32_1 = arith.constant 0 : i32
    return %c0_i32, %c0_i32_0 : i32, i32
  }
  func.func @transform_4(%arg0: i32) -> (i32, i32) {
    %c0_i32 = arith.constant 0 : i32
    %c0_i32_0 = arith.constant 0 : i32
    %c0_i32_1 = arith.constant 0 : i32
    return %c0_i32, %c0_i32_0 : i32, i32
  }
  func.func @transform_5(%arg0: i32) -> (i32, i32) {
    %c0_i32 = arith.constant 0 : i32
    %c0_i32_0 = arith.constant 0 : i32
    %c0_i32_1 = arith.constant 0 : i32
    return %c0_i32, %c0_i32_0 : i32, i32
  }
  func.func @transform_6(%arg0: i32) -> (i32, i32) {
    %c0_i32 = arith.constant 0 : i32
    %c0_i32_0 = arith.constant 0 : i32
    %c0_i32_1 = arith.constant 0 : i32
    return %c0_i32, %c0_i32_0 : i32, i32
  }
  func.func @transform_7(%arg0: i32) -> (i32, i32) {
    %c0_i32 = arith.constant 0 : i32
    %c0_i32_0 = arith.constant 0 : i32
    return %c0_i32, %arg0 : i32, i32
  }
}

</mosaic_0001>

<bundles_post_ra>
// kernel: tpu_custom_call.1
= control target key start
LH: loop header
LB: loop body
LE: loop exit
PB: predicated region body
PF: predicated region fallthrough
CT: control target
= control target key end

     0   :  { %s1736_s0 = inlined_call_operand.vmem [shape: bf16[128,32], index: 0, kind: input, shape index: {}]   ;;  %s1737_s1 = inlined_call_operand.vmem [shape: f32[32,128], index: 1, kind: input, shape index: {}]   ;;  %s1738_s2 = inlined_call_operand.vmem [shape: f32[1,128], index: 2, kind: input, shape index: {}]   ;;  %s1739_s3 = inlined_call_operand.hbm [shape: f32[128,128], index: 3, kind: input, shape index: {}]   ;;  %s1740_s4 = inlined_call_operand.vmem [shape: f32[1,128], index: 4, kind: input, shape index: {}]   ;;  %s1741_s5 = inlined_call_operand.vmem [shape: f32[1,128], index: 5, kind: input, shape index: {}]   ;;  %s1742_s6 = inlined_call_operand.<no memory space> [shape: f32[1,1], index: 6, kind: input, shape index: {}]   ;;  %s1743_s7 = inlined_call_operand.hbm [shape: f32[1,128], index: 7, kind: output, shape index: {}]  }
   0x1   :  { %v12_v0 = vstv %s1742_s6 }
   0x2   :  { %13 = vst [vmem:[#allocation2] sm:$0x1] %v12_v0 }
   0x3   :  { %14 = vsyncpa [#allocation4], 0 }
   0x4   :  { %15 = vsyncpa [#allocation5], 0  ;;  %s26_s28 = sshll.u32 %s1739_s3, 4  ;;  %s1089_s29 = smov [#allocation3]   ;;  %s27_s28 = int_to_ptr.hbm [resolvable:$true] %s26_s28 }
   0x5   :  { %s28_s30 = sshll.u32 %s1089_s29, 4  ;;  %s1090_s8 = smov 128   ;;  %s29_s30 = int_to_ptr.vmem [resolvable:$true] %s28_s30 }
   0x6   :  { %s1091_s9 = smov 8  }
   0x7   :  { %34 = dma.hbm_to_vmem [thread:$0]  %s27_s28, 2048, %s29_s30, [#allocation4], %s1090_s8, %s1090_s8, %s1091_s9  }
   0x8   :  { %1085 = dma.done.wait [#allocation4], 2048  }
   0x9   :  { %1086 = vsyncadd [#allocation4], 4294965248  ;;  %v80_v1 = vld [vmem:[%s1737_s1 + $0x18] sm:$0xff]  ;;  %v79_v2 = vld [vmem:[%s1737_s1 + $0x10] sm:$0xff]  ;;  %vm85_vm0 = vcmask 261120   ;;  %s847_s3 = sshll.u32 %s1743_s7, 4  ;;  %s848_s3 = int_to_ptr.hbm [resolvable:$true] %s847_s3 }
   0xa   :  { %146 = vmatpush.msra.mxu0 %v80_v1  ;;  %928 = vmatpush.msra.mxu3 %v80_v1  ;;  %v890_v3 = vld [vmem:[%s1736_s0] sm:$0xff]   ;;  %v925_v4 = vld [vmem:[%s1736_s0 + $0x28] sm:$0xff]   ;;  %v926_v12 = vld [vmem:[%s1736_s0 + $0x30] sm:$0xff]  }
   0xb   :  { %v78_v5 = vld [vmem:[%s1737_s1 + $0x8] sm:$0xff]  ;;  %v77_v6 = vld [vmem:[%s1737_s1] sm:$0xff]  ;;  %v891_v7 = vunpack.c.l.bf16 %v890_v3  ;;  %v911_v8 = vunpack.c.l.bf16 %v925_v4  ;;  %v892_v9 = vunpack.c.h.bf16 %v890_v3  ;;  %v912_v10 = vunpack.c.h.bf16 %v925_v4  ;;  %v922_v17 = vld [vmem:[%s1736_s0 + $0x10] sm:$0xff]  }
   0xc   :  { %147 = vmatpush.msra.mxu0 %v79_v2  ;;  %929 = vmatpush.msra.mxu3 %v79_v2  ;;  %v921_v11 = vld [vmem:[%s1736_s0 + $0x8] sm:$0xff]   ;;  %v915_v14 = vunpack.c.l.bf16 %v926_v12  ;;  %v916_v16 = vunpack.c.h.bf16 %v926_v12  ;;  %v927_v18 = vld [vmem:[%s1736_s0 + $0x38] sm:$0xff]   ;;  %v899_v19 = vunpack.c.l.bf16 %v922_v17  ;;  %v900_v21 = vunpack.c.h.bf16 %v922_v17  ;;  %v924_v36 = vld [vmem:[%s1736_s0 + $0x20] sm:$0xff]  }
   0xd   :  { %v895_v13 = vunpack.c.l.bf16 %v921_v11  ;;  %v896_v15 = vunpack.c.h.bf16 %v921_v11  ;;  %v919_v20 = vunpack.c.l.bf16 %v927_v18  ;;  %v920_v22 = vunpack.c.h.bf16 %v927_v18  ;;  %v262_v23 = vld [vmem:[#allocation3 + $0x78] sm:$0xff]  ;;  %v261_v24 = vld [vmem:[#allocation3 + $0x70] sm:$0xff]  ;;  %v260_v26 = vld [vmem:[#allocation3 + $0x68] sm:$0xff] }
   0xe   :  { %148 = vmatpush.msra.mxu0 %v78_v5  ;;  %930 = vmatpush.msra.mxu3 %v78_v5  ;;  %v923_v25 = vld [vmem:[%s1736_s0 + $0x18] sm:$0xff]   ;;  %v259_v28 = vld [vmem:[#allocation3 + $0x60] sm:$0xff]  ;;  %v256_v31 = vld [vmem:[#allocation3 + $0x48] sm:$0xff]  ;;  %v907_v38 = vunpack.c.l.bf16 %v924_v36  ;;  %v908_v41 = vunpack.c.h.bf16 %v924_v36 }
   0xf   :  { %267 = vmatpush.msra.mxu1 %v262_v23  ;;  %932 = vmatpush.msra.mxu2 %v262_v23  ;;  %v903_v27 = vunpack.c.l.bf16 %v923_v25  ;;  %v258_v29 = vld [vmem:[#allocation3 + $0x58] sm:$0xff]  ;;  %v257_v30 = vld [vmem:[#allocation3 + $0x50] sm:$0xff]  ;;  %v904_v32 = vunpack.c.h.bf16 %v923_v25  ;;  %v255_v33 = vld [vmem:[#allocation3 + $0x40] sm:$0xff] }
  0x10   :  { %149 = vmatpush.msra.mxu0 %v77_v6  ;;  %931 = vmatpush.msra.mxu3 %v77_v6  ;;  %v254_v34 = vld [vmem:[#allocation3 + $0x38] sm:$0xff]  ;;  %v253_v35 = vld [vmem:[#allocation3 + $0x30] sm:$0xff]  ;;  %v252_v37 = vld [vmem:[#allocation3 + $0x28] sm:$0xff] }
  0x11   :  { %857 = vmatmul.msk.f32.vlgmr.msra.gmra.mxu0 %vm85_vm0, %v891_v7  ;;  %867 = vmatmul.msk.f32.vlgmr.msra.gmra.mxu3 %vm85_vm0, %v911_v8  ;;  %v251_v39 = vld [vmem:[#allocation3 + $0x20] sm:$0xff]  ;;  %v250_v40 = vld [vmem:[#allocation3 + $0x18] sm:$0xff]  ;;  %v249_v42 = vld [vmem:[#allocation3 + $0x10] sm:$0xff] }
  0x12   :  { %933 = vmatpush.msrb.mxu3 %v262_v23  ;;  %268 = vmatpush.msra.mxu1 %v261_v24  ;;  %v248_v43 = vld [vmem:[#allocation3 + $0x8] sm:$0xff]  ;;  %v247_v44 = vld [vmem:[#allocation3] sm:$0xff]  ;;  %v1195_v45 = vld [vmem:[%s1738_s2] ss:$0 sm:$0xff] }
  0x13   :  { %934 = vmatpush.msra.mxu2 %v261_v24 }
  0x14   :  { %935 = vmatpush.msrb.mxu3 %v261_v24  ;;  %269 = vmatpush.msra.mxu1 %v260_v26 }
  0x15   :  { %936 = vmatpush.msra.mxu2 %v260_v26 }
  0x16   :  { %937 = vmatpush.msrb.mxu3 %v260_v26  ;;  %270 = vmatpush.msra.mxu1 %v259_v28  ;;  %v432_v26 = vld [vmem:[#allocation2] sm:$0x1] }
  0x17   :  { %938 = vmatpush.msra.mxu2 %v259_v28 }
  0x18   :  { %939 = vmatpush.msrb.mxu3 %v259_v28  ;;  %271 = vmatpush.msra.mxu1 %v258_v29 }
  0x19   :  { %858 = vmatmul.msk.f32.gmra.mxu0 %vm85_vm0, %v892_v9  ;;  %868 = vmatmul.msk.f32.gmra.mxu3 %vm85_vm0, %v912_v10 }
  0x1a   :  { %941 = vmatpush.msrb.mxu3 %v258_v29  ;;  %940 = vmatpush.msra.mxu2 %v258_v29 }
  0x1b   :  { %272 = vmatpush.msra.mxu1 %v257_v30 }
  0x1c   :  { %943 = vmatpush.msrb.mxu3 %v257_v30  ;;  %942 = vmatpush.msra.mxu2 %v257_v30 }
  0x1d   :  { %273 = vmatpush.msra.mxu1 %v256_v31 }
  0x1e   :  { %945 = vmatpush.msrb.mxu3 %v256_v31  ;;  %944 = vmatpush.msra.mxu2 %v256_v31 }
  0x1f   :  { %274 = vmatpush.msra.mxu1 %v255_v33 }
  0x20   :  { %947 = vmatpush.msrb.mxu3 %v255_v33  ;;  %946 = vmatpush.msra.mxu2 %v255_v33 }
  0x21   :  { %859 = vmatmul.msk.f32.gmra.mxu0 %vm85_vm0, %v895_v13  ;;  %869 = vmatmul.msk.f32.gmra.mxu3 %vm85_vm0, %v915_v14 }
  0x22   :  { %275 = vmatpush.msra.mxu1 %v254_v34  ;;  %949 = vmatpush.msrb.mxu3 %v254_v34 }
  0x23   :  { %948 = vmatpush.msra.mxu2 %v254_v34 }
  0x24   :  { %276 = vmatpush.msra.mxu1 %v253_v35  ;;  %951 = vmatpush.msrb.mxu3 %v253_v35 }
  0x25   :  { %950 = vmatpush.msra.mxu2 %v253_v35 }
  0x26   :  { %277 = vmatpush.msra.mxu1 %v252_v37  ;;  %953 = vmatpush.msrb.mxu3 %v252_v37 }
  0x27   :  { %952 = vmatpush.msra.mxu2 %v252_v37 }
  0x28   :  { %278 = vmatpush.msra.mxu1 %v251_v39  ;;  %955 = vmatpush.msrb.mxu3 %v251_v39 }
  0x29   :  { %860 = vmatmul.msk.f32.gmra.mxu0 %vm85_vm0, %v896_v15  ;;  %870 = vmatmul.msk.f32.gmra.mxu3 %vm85_vm0, %v916_v16 }
  0x2a   :  { %954 = vmatpush.msra.mxu2 %v251_v39  ;;  %279 = vmatpush.msra.mxu1 %v250_v40 }
  0x2b   :  { %957 = vmatpush.msrb.mxu3 %v250_v40 }
  0x2c   :  { %956 = vmatpush.msra.mxu2 %v250_v40  ;;  %280 = vmatpush.msra.mxu1 %v249_v42 }
  0x2d   :  { %959 = vmatpush.msrb.mxu3 %v249_v42 }
  0x2e   :  { %958 = vmatpush.msra.mxu2 %v249_v42  ;;  %281 = vmatpush.msra.mxu1 %v248_v43 }
  0x2f   :  { %961 = vmatpush.msrb.mxu3 %v248_v43 }
  0x30   :  { %960 = vmatpush.msra.mxu2 %v248_v43  ;;  %282 = vmatpush.msra.mxu1 %v247_v44 }
  0x31   :  { %861 = vmatmul.msk.f32.gmra.mxu0 %vm85_vm0, %v899_v19  ;;  %871 = vmatmul.msk.f32.gmra.mxu3 %vm85_vm0, %v919_v20 }
  0x32   :  { %963 = vmatpush.msrb.mxu3 %v247_v44  ;;  %962 = vmatpush.msra.mxu2 %v247_v44 }
  0x39   :  { %862 = vmatmul.msk.f32.gmra.mxu0 %vm85_vm0, %v900_v21  ;;  %872 = vmatmul.msk.f32.gmra.mxu3 %vm85_vm0, %v920_v22 }
  0x41   :  { %863 = vmatmul.msk.f32.gmra.mxu0 %vm85_vm0, %v903_v27  ;;  %v1092_v27 = vmov 0  }
  0x42   :  { %969 = vset.pattern.permute.xlu0 %v1092_v27 }
  0x43   :  { %435 = vperm.xlu0 %969, %v432_v26  }
  0x49   :  { %864 = vmatmul.msk.f32.gmra.mxu0 %vm85_vm0, %v904_v32 }
  0x51   :  { %865 = vmatmul.msk.f32.gmra.mxu0 %vm85_vm0, %v907_v38 }
  0x59   :  { %866 = vmatmul.msk.f32.gmra.mxu0 %vm85_vm0, %v908_v41 }
  0x8e   :  { %v151_v46 = vpop.f32.mrf.mxu0 }
  0x8f   :  { %v152_v47 = vadd.f32 %v1195_v45, %v151_v46 }
  0x91   :  { %vm199_vm1 = vcmp.gt.f32.partialorder %v152_v47, 0.0  ;;  %v215_v48 = vmul.f32 0.2, %v152_v47 }
  0x93   :  { %v231_v49 = vsel %vm199_vm1, %v152_v47, %v215_v48 }
  0x94   :  { %v1198_v50 = vpop.f32.mrf.mxu3  ;;  %283 = vmatmul.f32.vlgmr.msra.gmra.mxu1 %v231_v49  ;;  %v1228_v49 = vld [vmem:[%s1740_s4] ss:$0 sm:$0xff]  ;;  %s1093_s4 = smov [#allocation6]  }
  0x95   :  { %v182_v35 = vadd.f32 %v1195_v45, %v1198_v50 }
  0x96   :  { %v154_v51 = vpop.f32.mrf.mxu0 }
  0x97   :  { %v155_v52 = vadd.f32 %v1195_v45, %v154_v51  ;;  %v225_v37 = vmul.f32 0.2, %v182_v35  ;;  %vm209_vm13 = vcmp.gt.f32.partialorder %v182_v35, 0.0 }
  0x99   :  { %vm200_vm2 = vcmp.gt.f32.partialorder %v155_v52, 0.0  ;;  %v216_v53 = vmul.f32 0.2, %v155_v52  ;;  %v241_v39 = vsel %vm209_vm13, %v182_v35, %v225_v37 }
  0x9b   :  { %v232_v54 = vsel %vm200_vm2, %v155_v52, %v216_v53  ;;  %v1234_v52 = vld [vmem:[%s1741_s5] ss:$0 sm:$0xff]  ;;  %s845_s5 = sshll.u32 %s1093_s4, 4  ;;  %s846_s5 = int_to_ptr.vmem [resolvable:$true] %s845_s5 }
  0x9c   :  { %v1201_v55 = vpop.f32.mrf.mxu3  ;;  %286 = vmatmul.f32.gmra.mxu1 %v232_v54 }
  0x9d   :  { %v185_v38 = vadd.f32 %v1195_v45, %v1201_v55 }
  0x9e   :  { %v157_v56 = vpop.f32.mrf.mxu0 }
  0x9f   :  { %v158_v57 = vadd.f32 %v1195_v45, %v157_v56  ;;  %v226_v40 = vmul.f32 0.2, %v185_v38  ;;  %vm210_vm14 = vcmp.gt.f32.partialorder %v185_v38, 0.0 }
  0xa1   :  { %vm201_vm3 = vcmp.gt.f32.partialorder %v158_v57, 0.0  ;;  %v217_v58 = vmul.f32 0.2, %v158_v57  ;;  %v242_v42 = vsel %vm210_vm14, %v185_v38, %v226_v40 }
  0xa3   :  { %v233_v59 = vsel %vm201_vm3, %v158_v57, %v217_v58 }
  0xa4   :  { %v1204_v60 = vpop.f32.mrf.mxu3  ;;  %289 = vmatmul.f32.gmra.mxu1 %v233_v59 }
  0xa5   :  { %v188_v41 = vadd.f32 %v1195_v45, %v1204_v60 }
  0xa6   :  { %v160_v61 = vpop.f32.mrf.mxu0 }
  0xa7   :  { %v161_v62 = vadd.f32 %v1195_v45, %v160_v61  ;;  %v227_v43 = vmul.f32 0.2, %v188_v41  ;;  %vm211_vm15 = vcmp.gt.f32.partialorder %v188_v41, 0.0 }
  0xa9   :  { %vm202_vm4 = vcmp.gt.f32.partialorder %v161_v62, 0.0  ;;  %v218_v63 = vmul.f32 0.2, %v161_v62  ;;  %v243_v46 = vsel %vm211_vm15, %v188_v41, %v227_v43 }
  0xab   :  { %v234_v0 = vsel %vm202_vm4, %v161_v62, %v218_v63 }
  0xac   :  { %v1207_v1 = vpop.f32.mrf.mxu3  ;;  %292 = vmatmul.f32.gmra.mxu1 %v234_v0 }
  0xad   :  { %v191_v44 = vadd.f32 %v1195_v45, %v1207_v1 }
  0xae   :  { %v163_v2 = vpop.f32.mrf.mxu0 }
  0xaf   :  { %v164_v3 = vadd.f32 %v1195_v45, %v163_v2  ;;  %v228_v47 = vmul.f32 0.2, %v191_v44  ;;  %vm212_vm0 = vcmp.gt.f32.partialorder %v191_v44, 0.0 }
  0xb1   :  { %vm203_vm5 = vcmp.gt.f32.partialorder %v164_v3, 0.0  ;;  %v219_v4 = vmul.f32 0.2, %v164_v3  ;;  %v244_v48 = vsel %vm212_vm0, %v191_v44, %v228_v47 }
  0xb3   :  { %v235_v5 = vsel %vm203_vm5, %v164_v3, %v219_v4 }
  0xb4   :  { %v193_v6 = vpop.f32.mrf.mxu3  ;;  %295 = vmatmul.f32.gmra.mxu1 %v235_v5 }
  0xb5   :  { %v194_v7 = vadd.f32 %v1195_v45, %v193_v6 }
  0xb6   :  { %v166_v8 = vpop.f32.mrf.mxu0 }
  0xb7   :  { %v229_v9 = vmul.f32 0.2, %v194_v7  ;;  %v167_v10 = vadd.f32 %v1195_v45, %v166_v8  ;;  %vm213_vm6 = vcmp.gt.f32.partialorder %v194_v7, 0.0 }
  0xb9   :  { %v245_v11 = vsel %vm213_vm6, %v194_v7, %v229_v9  ;;  %vm204_vm7 = vcmp.gt.f32.partialorder %v167_v10, 0.0  ;;  %v220_v12 = vmul.f32 0.2, %v167_v10 }
  0xba   :  { %325 = vmatmul.f32.vlgmr.msrb.gmra.mxu3 %v245_v11 }
  0xbb   :  { %v236_v13 = vsel %vm204_vm7, %v167_v10, %v220_v12 }
  0xbc   :  { %v196_v14 = vpop.f32.mrf.mxu3  ;;  %298 = vmatmul.f32.gmra.mxu1 %v236_v13 }
  0xbd   :  { %v197_v15 = vadd.f32 %v1195_v45, %v196_v14 }
  0xbe   :  { %v169_v16 = vpop.f32.mrf.mxu0 }
  0xbf   :  { %v170_v17 = vadd.f32 %v1195_v45, %v169_v16  ;;  %vm214_vm8 = vcmp.gt.f32.partialorder %v197_v15, 0.0  ;;  %v230_v18 = vmul.f32 0.2, %v197_v15 }
  0xc1   :  { %v246_v19 = vsel %vm214_vm8, %v197_v15, %v230_v18  ;;  %vm205_vm9 = vcmp.gt.f32.partialorder %v170_v17, 0.0  ;;  %v221_v20 = vmul.f32 0.2, %v170_v17 }
  0xc2   :  { %328 = vmatmul.f32.gmra.mxu3 %v246_v19 }
  0xc3   :  { %v237_v21 = vsel %vm205_vm9, %v170_v17, %v221_v20 }
  0xc4   :  { %301 = vmatmul.f32.gmra.mxu1 %v237_v21 }
  0xc6   :  { %v172_v22 = vpop.f32.mrf.mxu0 }
  0xc7   :  { %v173_v23 = vadd.f32 %v1195_v45, %v172_v22 }
  0xc9   :  { %vm206_vm10 = vcmp.gt.f32.partialorder %v173_v23, 0.0  ;;  %v222_v24 = vmul.f32 0.2, %v173_v23 }
  0xcb   :  { %v238_v25 = vsel %vm206_vm10, %v173_v23, %v222_v24 }
  0xcc   :  { %304 = vmatmul.f32.vlgmr.msra.gmra.mxu2 %v238_v25 }
  0xce   :  { %v175_v28 = vpop.f32.mrf.mxu0 }
  0xcf   :  { %v176_v29 = vadd.f32 %v1195_v45, %v175_v28 }
  0xd1   :  { %vm207_vm11 = vcmp.gt.f32.partialorder %v176_v29, 0.0  ;;  %v223_v30 = vmul.f32 0.2, %v176_v29 }
  0xd3   :  { %v239_v31 = vsel %vm207_vm11, %v176_v29, %v223_v30 }
  0xd4   :  { %307 = vmatmul.f32.gmra.mxu2 %v239_v31 }
  0xd6   :  { %v178_v32 = vpop.f32.mrf.mxu0 }
  0xd7   :  { %v179_v33 = vadd.f32 %v1195_v45, %v178_v32 }
  0xd9   :  { %vm208_vm12 = vcmp.gt.f32.partialorder %v179_v33, 0.0  ;;  %v224_v34 = vmul.f32 0.2, %v179_v33 }
  0xdb   :  { %v240_v36 = vsel %vm208_vm12, %v179_v33, %v224_v34 }
  0xdc   :  { %310 = vmatmul.f32.gmra.mxu2 %v240_v36 }
  0xe4   :  { %313 = vmatmul.f32.gmra.mxu2 %v241_v39 }
  0xec   :  { %316 = vmatmul.f32.gmra.mxu2 %v242_v42 }
  0xf4   :  { %319 = vmatmul.f32.gmra.mxu2 %v243_v46 }
  0xfc   :  { %322 = vmatmul.f32.gmra.mxu2 %v244_v48 }
 0x111   :  { %v284_v50 = vpop.f32.mrf.mxu1 }
 0x112   :  { %v285_v51 = vadd.f32 %v1228_v49, %v284_v50 }
 0x114   :  { %v348_v45 = vmul.f32 0.2, %v285_v51  ;;  %vm332_vm1 = vcmp.gt.f32.partialorder %v285_v51, 0.0 }
 0x116   :  { %v364_v53 = vsel %vm332_vm1, %v285_v51, %v348_v45 }
 0x117   :  { %v384_v54 = vmul.f32 %v1234_v52, %v364_v53 }
 0x119   :  { %v287_v55 = vpop.f32.mrf.mxu1  ;;  %400 = vadd.xlane.f32.xlu0 %v384_v54 }
 0x11a   :  { %v288_v56 = vadd.f32 %v1228_v49, %v287_v55 }
 0x11c   :  { %v349_v57 = vmul.f32 0.2, %v288_v56  ;;  %vm333_vm2 = vcmp.gt.f32.partialorder %v288_v56, 0.0 }
 0x11e   :  { %v365_v58 = vsel %vm333_vm2, %v288_v56, %v349_v57 }
 0x11f   :  { %v385_v59 = vmul.f32 %v1234_v52, %v365_v58 }
 0x121   :  { %v290_v60 = vpop.f32.mrf.mxu1  ;;  %402 = vadd.xlane.f32.xlu1 %v385_v59 }
 0x122   :  { %v291_v61 = vadd.f32 %v1228_v49, %v290_v60 }
 0x124   :  { %v350_v62 = vmul.f32 0.2, %v291_v61  ;;  %vm334_vm3 = vcmp.gt.f32.partialorder %v291_v61, 0.0 }
 0x126   :  { %v366_v63 = vsel %vm334_vm3, %v291_v61, %v350_v62 }
 0x127   :  { %v386_v0 = vmul.f32 %v1234_v52, %v366_v63 }
 0x129   :  { %v293_v1 = vpop.f32.mrf.mxu1  ;;  %404 = vadd.xlane.f32.xlu1 %v386_v0 }
 0x12a   :  { %v294_v2 = vadd.f32 %v1228_v49, %v293_v1 }
 0x12c   :  { %v351_v3 = vmul.f32 0.2, %v294_v2  ;;  %vm335_vm4 = vcmp.gt.f32.partialorder %v294_v2, 0.0 }
 0x12e   :  { %v367_v4 = vsel %vm335_vm4, %v294_v2, %v351_v3 }
 0x12f   :  { %v387_v5 = vmul.f32 %v1234_v52, %v367_v4  ;;  %v436_v4 = vpop.permute.xlu0 %435 }
 0x131   :  { %v296_v6 = vpop.f32.mrf.mxu1  ;;  %406 = vadd.xlane.f32.xlu2 %v387_v5  ;;  %v1267_v5 = vperm.slane %v436_v4, 0 }
 0x132   :  { %v297_v7 = vadd.f32 %v1228_v49, %v296_v6 }
 0x134   :  { %v352_v8 = vmul.f32 0.2, %v297_v7  ;;  %vm336_vm5 = vcmp.gt.f32.partialorder %v297_v7, 0.0 }
 0x136   :  { %v368_v9 = vsel %vm336_vm5, %v297_v7, %v352_v8 }
 0x137   :  { %v388_v10 = vmul.f32 %v1234_v52, %v368_v9 }
 0x139   :  { %v299_v11 = vpop.f32.mrf.mxu1  ;;  %408 = vadd.xlane.f32.xlu2 %v388_v10 }
 0x13a   :  { %v300_v12 = vadd.f32 %v1228_v49, %v299_v11 }
 0x13c   :  { %v353_v13 = vmul.f32 0.2, %v300_v12  ;;  %vm337_vm6 = vcmp.gt.f32.partialorder %v300_v12, 0.0 }
 0x13d   :  { %v326_v14 = vpop.f32.mrf.mxu3 }
 0x13e   :  { %v369_v15 = vsel %vm337_vm6, %v300_v12, %v353_v13  ;;  %v327_v56 = vadd.f32 %v1228_v49, %v326_v14 }
 0x13f   :  { %v389_v16 = vmul.f32 %v1234_v52, %v369_v15 }
 0x140   :  { %v362_v60 = vmul.f32 0.2, %v327_v56  ;;  %vm346_vm15 = vcmp.gt.f32.partialorder %v327_v56, 0.0 }
 0x141   :  { %v302_v17 = vpop.f32.mrf.mxu1  ;;  %410 = vadd.xlane.f32.xlu1 %v389_v16 }
 0x142   :  { %v303_v18 = vadd.f32 %v1228_v49, %v302_v17  ;;  %v378_v0 = vsel %vm346_vm15, %v327_v56, %v362_v60 }
 0x143   :  { %v398_v2 = vmul.f32 %v1234_v52, %v378_v0 }
 0x144   :  { %v354_v19 = vmul.f32 0.2, %v303_v18  ;;  %vm338_vm7 = vcmp.gt.f32.partialorder %v303_v18, 0.0 }
 0x145   :  { %v329_v20 = vpop.f32.mrf.mxu3 }
 0x146   :  { %v330_v21 = vadd.f32 %v1228_v49, %v329_v20  ;;  %v370_v22 = vsel %vm338_vm7, %v303_v18, %v354_v19 }
 0x147   :  { %v390_v23 = vmul.f32 %v1234_v52, %v370_v22 }
 0x148   :  { %v363_v24 = vmul.f32 0.2, %v330_v21  ;;  %vm347_vm8 = vcmp.gt.f32.partialorder %v330_v21, 0.0 }
 0x149   :  { %412 = vadd.xlane.f32.xlu2 %v390_v23 }
 0x14a   :  { %v379_v25 = vsel %vm347_vm8, %v330_v21, %v363_v24  ;;  %vm780_vm8 = vcmask 130112  }
 0x14b   :  { %v399_v26 = vmul.f32 %v1234_v52, %v379_v25 }
 0x14d   :  { %430 = vadd.xlane.f32.xlu0 %v399_v26 }
 0x14f   :  { %v305_v27 = vpop.f32.mrf.mxu2 }
 0x150   :  { %v306_v28 = vadd.f32 %v1228_v49, %v305_v27 }
 0x152   :  { %v355_v29 = vmul.f32 0.2, %v306_v28  ;;  %vm339_vm9 = vcmp.gt.f32.partialorder %v306_v28, 0.0 }
 0x154   :  { %v371_v30 = vsel %vm339_vm9, %v306_v28, %v355_v29 }
 0x155   :  { %v391_v31 = vmul.f32 %v1234_v52, %v371_v30 }
 0x157   :  { %v308_v32 = vpop.f32.mrf.mxu2  ;;  %414 = vadd.xlane.f32.xlu1 %v391_v31 }
 0x158   :  { %v309_v33 = vadd.f32 %v1228_v49, %v308_v32 }
 0x15a   :  { %v356_v34 = vmul.f32 0.2, %v309_v33  ;;  %vm340_vm10 = vcmp.gt.f32.partialorder %v309_v33, 0.0 }
 0x15c   :  { %v372_v35 = vsel %vm340_vm10, %v309_v33, %v356_v34 }
 0x15d   :  { %v392_v36 = vmul.f32 %v1234_v52, %v372_v35 }
 0x15f   :  { %v311_v37 = vpop.f32.mrf.mxu2  ;;  %416 = vadd.xlane.f32.xlu2 %v392_v36 }
 0x160   :  { %v312_v38 = vadd.f32 %v1228_v49, %v311_v37 }
 0x162   :  { %v357_v39 = vmul.f32 0.2, %v312_v38  ;;  %vm341_vm11 = vcmp.gt.f32.partialorder %v312_v38, 0.0 }
 0x164   :  { %v373_v40 = vsel %vm341_vm11, %v312_v38, %v357_v39 }
 0x165   :  { %v393_v41 = vmul.f32 %v1234_v52, %v373_v40 }
 0x167   :  { %v314_v42 = vpop.f32.mrf.mxu2  ;;  %418 = vadd.xlane.f32.xlu1 %v393_v41 }
 0x168   :  { %v315_v43 = vadd.f32 %v1228_v49, %v314_v42 }
 0x16a   :  { %v358_v44 = vmul.f32 0.2, %v315_v43  ;;  %vm342_vm12 = vcmp.gt.f32.partialorder %v315_v43, 0.0 }
 0x16c   :  { %v374_v46 = vsel %vm342_vm12, %v315_v43, %v358_v44  ;;  %v775_v43 = vlaneseq  ;;  %vm784_vm12 = vcmask 195712  }
 0x16d   :  { %v394_v47 = vmul.f32 %v1234_v52, %v374_v46 }
 0x16f   :  { %v317_v48 = vpop.f32.mrf.mxu2  ;;  %420 = vadd.xlane.f32.xlu2 %v394_v47 }
 0x170   :  { %v318_v50 = vadd.f32 %v1228_v49, %v317_v48 }
 0x172   :  { %v359_v51 = vmul.f32 0.2, %v318_v50  ;;  %vm343_vm13 = vcmp.gt.f32.partialorder %v318_v50, 0.0 }
 0x174   :  { %v375_v45 = vsel %vm343_vm13, %v318_v50, %v359_v51 }
 0x175   :  { %v395_v53 = vmul.f32 %v1234_v52, %v375_v45 }
 0x177   :  { %v320_v54 = vpop.f32.mrf.mxu2  ;;  %422 = vadd.xlane.f32.xlu1 %v395_v53 }
 0x178   :  { %v321_v55 = vadd.f32 %v1228_v49, %v320_v54 }
 0x17a   :  { %v360_v57 = vmul.f32 0.2, %v321_v55  ;;  %vm344_vm14 = vcmp.gt.f32.partialorder %v321_v55, 0.0 }
 0x17c   :  { %v376_v58 = vsel %vm344_vm14, %v321_v55, %v360_v57  ;;  %v1308_v55 = vand.u32 127, %v775_v43 }
 0x17d   :  { %v396_v59 = vmul.f32 %v1234_v52, %v376_v58 }
 0x17e   :  { %v1317_v60 = vadd.s32 4294967288, %v1308_v55 }
 0x17f   :  { %v323_v61 = vpop.f32.mrf.mxu2  ;;  %424 = vadd.xlane.f32.xlu2 %v396_v59 }
 0x180   :  { %v324_v62 = vadd.f32 %v1228_v49, %v323_v61 }
 0x182   :  { %v361_v63 = vmul.f32 0.2, %v324_v62  ;;  %vm345_vm0 = vcmp.gt.f32.partialorder %v324_v62, 0.0 }
 0x184   :  { %v377_v1 = vsel %vm345_vm0, %v324_v62, %v361_v63 }
 0x185   :  { %v397_v3 = vmul.f32 %v1234_v52, %v377_v1 }
 0x187   :  { %428 = vadd.xlane.f32.xlu2 %v398_v2  ;;  %426 = vadd.xlane.f32.xlu1 %v397_v3 }
 0x18c   :  { %v401_v6 = vpop.xlane.xlu0 %400 }
 0x18d   :  { %v439_v8 = vadd.f32 %v1267_v5, %v401_v6 }
 0x18f   :  { %v873_v9 = vmul.f32 -1.442695, %v439_v8 }
 0x191   :  { %973 = vpow2.f32 %v873_v9  ;;  %v1336_v9 = vadd.s32 4294967280, %v1308_v55 }
 0x194   :  { %v403_v7 = vpop.xlane.xlu1 %402 }
 0x195   :  { %v440_v49 = vadd.f32 %v1267_v5, %v403_v7 }
 0x197   :  { %v874_v12 = vmul.f32 -1.442695, %v440_v49  ;;  %v974_v52 = vpop.eup %973 }
 0x198   :  { %v1273_v17 = vadd.f32 1.0, %v974_v52 }
 0x199   :  { %975 = vpow2.f32 %v874_v12 }
 0x19a   :  { %v528_v56 = vand.u32 2147483647, %v1273_v17  ;;  %vm524_vm2 = vweird.f32 %v1273_v17  ;;  %v530_v0 = vand.u32 2147483648, %v1273_v17 }
 0x19c   :  { %v405_v11 = vpop.xlane.xlu1 %404  ;;  %vm1330_vm4 = vcmp.eq.f32.partialorder %v528_v56, 8.507059e+37 }
 0x19d   :  { %v441_v13 = vadd.f32 %v1267_v5, %v405_v11 }
 0x19f   :  { %v875_v15 = vmul.f32 -1.442695, %v441_v13  ;;  %v976_v19 = vpop.eup %975 }
 0x1a0   :  { %v1277_v21 = vadd.f32 1.0, %v976_v19 }
 0x1a1   :  { %977 = vpow2.f32 %v875_v15  ;;  %v531_v15 = vor.u32 1.1754944e-38, %v530_v0 }
 0x1a2   :  { %979 = vrcp.f32 %v1273_v17  ;;  %v543_v8 = vand.u32 2147483647, %v1277_v21  ;;  %v545_v11 = vand.u32 2147483648, %v1277_v21  ;;  %vm539_vm6 = vweird.f32 %v1277_v21 }
 0x1a4   :  { %v407_v10 = vpop.xlane.xlu2 %406  ;;  %vm1352_vm7 = vcmp.eq.f32.partialorder %v543_v8, 8.507059e+37 }
 0x1a5   :  { %v442_v14 = vadd.f32 %v1267_v5, %v407_v10 }
 0x1a7   :  { %v876_v18 = vmul.f32 -1.442695, %v442_v14  ;;  %v978_v24 = vpop.eup %977 }
 0x1a8   :  { %v1281_v26 = vpop.eup %979  ;;  %v1283_v28 = vadd.f32 1.0, %v978_v24  ;;  %v546_v24 = vor.u32 1.1754944e-38, %v545_v11 }
 0x1a9   :  { %981 = vpow2.f32 %v876_v18  ;;  %v520_v31 = vmul.f32 %v1281_v26, %v1273_v17  ;;  %vm525_vm1 = vweird.f32 %v1281_v26 }
 0x1aa   :  { %983 = vrcp.f32 %v1277_v21  ;;  %vm1326_vm3 = vmor %vm524_vm2, %vm525_vm1  ;;  %vm554_vm11 = vweird.f32 %v1283_v28  ;;  %vm788_vm1 = vcmask 261312  }
 0x1ab   :  { %v521_v37 = vsub.f32 1.0, %v520_v31 }
 0x1ac   :  { %v409_v16 = vpop.xlane.xlu2 %408 }
 0x1ad   :  { %v443_v20 = vadd.f32 %v1267_v5, %v409_v16  ;;  %v522_v46 = vmul.f32 %v1281_v26, %v521_v37 }
 0x1af   :  { %v877_v22 = vmul.f32 -1.442695, %v443_v20  ;;  %v982_v27 = vpop.eup %981  ;;  %v523_v58 = vadd.f32 %v1281_v26, %v522_v46  ;;  %v1357_v20 = vadd.s32 4294967272, %v1308_v55 }
 0x1b0   :  { %v1287_v32 = vadd.f32 1.0, %v982_v27  ;;  %v1290_v34 = vpop.eup %983  ;;  %v558_v27 = vand.u32 2147483647, %v1283_v28 }
 0x1b1   :  { %985 = vpow2.f32 %v877_v22  ;;  %v535_v39 = vmul.f32 %v1290_v34, %v1277_v21  ;;  %v527_v10 = vsel %vm1326_vm3, %v1281_v26, %v523_v58  ;;  %vm540_vm5 = vweird.f32 %v1290_v34 }
 0x1b2   :  { %987 = vrcp.f32 %v1283_v28  ;;  %v532_v22 = vsel %vm1330_vm4, %v531_v15, %v527_v10  ;;  %vm1361_vm9 = vmor %vm539_vm6, %vm540_vm5  ;;  %v573_v43 = vand.u32 2147483647, %v1287_v32  ;;  %vm559_vm15 = vcmp.eq.f32.partialorder %v558_v27, 8.507059e+37 }
 0x1b3   :  { %v536_v50 = vsub.f32 1.0, %v535_v39  ;;  %v777_v37 = vperm.slane %v532_v22, %v1308_v55  ;;  %vm569_vm0 = vweird.f32 %v1287_v32  ;;  %vm792_vm6 = vcmask 326912  }
 0x1b4   :  { %v411_v23 = vpop.xlane.xlu1 %410  ;;  %vm1413_vm3 = vcmp.eq.f32.partialorder %v573_v43, 8.507059e+37 }
 0x1b5   :  { %v444_v25 = vadd.f32 %v1267_v5, %v411_v23  ;;  %v537_v61 = vmul.f32 %v1290_v34, %v536_v50 }
 0x1b7   :  { %v878_v30 = vmul.f32 -1.442695, %v444_v25  ;;  %v986_v35 = vpop.eup %985  ;;  %v538_v13 = vadd.f32 %v1290_v34, %v537_v61  ;;  %v1366_v25 = vadd.s32 4294967264, %v1308_v55 }
 0x1b8   :  { %v1296_v40 = vadd.f32 1.0, %v986_v35  ;;  %v1299_v42 = vpop.eup %987 }
 0x1b9   :  { %989 = vpow2.f32 %v878_v30  ;;  %v550_v53 = vmul.f32 %v1299_v42, %v1283_v28  ;;  %v542_v26 = vsel %vm1361_vm9, %v1290_v34, %v538_v13  ;;  %vm555_vm10 = vweird.f32 %v1299_v42 }
 0x1ba   :  { %991 = vrcp.f32 %v1287_v32  ;;  %v560_v34 = vand.u32 2147483648, %v1283_v28  ;;  %vm1390_vm13 = vmor %vm554_vm11, %vm555_vm10  ;;  %v588_v6 = vand.u32 2147483647, %v1296_v40  ;;  %v590_v10 = vand.u32 2147483648, %v1296_v40 }
 0x1bb   :  { %v551_v1 = vsub.f32 1.0, %v550_v53  ;;  %vm584_vm5 = vweird.f32 %v1296_v40 }
 0x1bc   :  { %v413_v29 = vpop.xlane.xlu2 %412 }
 0x1bd   :  { %v445_v33 = vadd.f32 %v1267_v5, %v413_v29  ;;  %v552_v16 = vmul.f32 %v1299_v42, %v551_v1 }
 0x1bf   :  { %v879_v38 = vmul.f32 -1.442695, %v445_v33  ;;  %v990_v48 = vpop.eup %989  ;;  %v553_v31 = vadd.f32 %v1299_v42, %v552_v16  ;;  %v1447_v16 = vadd.s32 4294967248, %v1308_v55 }
 0x1c0   :  { %v431_v44 = vpop.xlane.xlu0 %430  ;;  %v1303_v45 = vpop.eup %991  ;;  %v1314_v59 = vadd.f32 1.0, %v990_v48 }
 0x1c1   :  { %993 = vpow2.f32 %v879_v38  ;;  %v454_v54 = vadd.f32 %v1267_v5, %v431_v44  ;;  %v565_v62 = vmul.f32 %v1303_v45, %v1287_v32  ;;  %v575_v44 = vand.u32 2147483648, %v1287_v32 }
 0x1c2   :  { %995 = vrcp.f32 %v1296_v40  ;;  %vm570_vm14 = vweird.f32 %v1303_v45  ;;  %vm599_vm9 = vweird.f32 %v1314_v59  ;;  %v605_v27 = vand.u32 2147483648, %v1314_v59 }
 0x1c3   :  { %v888_v2 = vmul.f32 -1.442695, %v454_v54  ;;  %v566_v52 = vsub.f32 1.0, %v565_v62  ;;  %vm1409_vm2 = vmor %vm569_vm0, %vm570_vm14  ;;  %v576_v62 = vor.u32 1.1754944e-38, %v575_v44  ;;  %vm796_vm0 = vcmask 392512  }
 0x1c5   :  { %v567_v29 = vmul.f32 %v1303_v45, %v566_v52 }
 0x1c7   :  { %v994_v63 = vpop.eup %993  ;;  %v568_v28 = vadd.f32 %v1303_v45, %v567_v29 }
 0x1c8   :  { %v1324_v4 = vpop.eup %995  ;;  %v1346_v14 = vadd.f32 1.0, %v994_v63  ;;  %v1418_v63 = vadd.s32 4294967256, %v1308_v55 }
 0x1c9   :  { %v580_v17 = vmul.f32 %v1324_v4, %v1296_v40  ;;  %v572_v32 = vsel %vm1409_vm2, %v1303_v45, %v568_v28  ;;  %vm585_vm4 = vweird.f32 %v1324_v4  ;;  %v603_v40 = vand.u32 2147483647, %v1314_v59 }
 0x1ca   :  { %v415_v36 = vpop.xlane.xlu1 %414  ;;  %v577_v13 = vsel %vm1413_vm3, %v576_v62, %v572_v32  ;;  %v618_v43 = vand.u32 2147483647, %v1346_v14  ;;  %vm614_vm14 = vweird.f32 %v1346_v14 }
 0x1cb   :  { %v446_v41 = vadd.f32 %v1267_v5, %v415_v36  ;;  %v581_v33 = vsub.f32 1.0, %v580_v17  ;;  %v787_v23 = vperm.slane %v577_v13, %v1357_v20  ;;  %vm1471_vm11 = vcmp.eq.f32.partialorder %v603_v40, 8.507059e+37 }
 0x1cd   :  { %v880_v51 = vmul.f32 -1.442695, %v446_v41  ;;  %v547_v41 = vsel %vm1352_vm7, %v546_v24, %v542_v26  ;;  %v582_v53 = vmul.f32 %v1324_v4, %v581_v33  ;;  %vm1441_vm7 = vmor %vm584_vm5, %vm585_vm4  ;;  %v591_v24 = vor.u32 1.1754944e-38, %v590_v10 }
 0x1ce   :  { %v779_v56 = vperm.slane %v547_v41, %v1317_v60 }
 0x1cf   :  { %997 = vpow2.f32 %v880_v51  ;;  %v557_v51 = vsel %vm1390_vm13, %v1299_v42, %v553_v31 }
 0x1d0   :  { %999 = vrcp.f32 %v1314_v59 }
 0x1d1   :  { %1001 = vpow2.f32 %v888_v2 }
 0x1d2   :  { %v417_v47 = vpop.xlane.xlu2 %416 }
 0x1d3   :  { %v447_v57 = vadd.f32 %v1267_v5, %v417_v47 }
 0x1d5   :  { %v881_v49 = vmul.f32 -1.442695, %v447_v57  ;;  %v998_v18 = vpop.eup %997  ;;  %v561_v57 = vor.u32 1.1754944e-38, %v560_v34 }
 0x1d6   :  { %v1374_v30 = vpop.eup %999  ;;  %v1378_v35 = vadd.f32 1.0, %v998_v18 }
 0x1d7   :  { %1003 = vpow2.f32 %v881_v49  ;;  %v1002_v39 = vpop.eup %1001  ;;  %v595_v48 = vmul.f32 %v1374_v30, %v1314_v59  ;;  %v562_v60 = vsel %vm559_vm15, %v561_v57, %v557_v51  ;;  %v781_v49 = vsel %vm780_vm8, %v779_v56, %v777_v37 }
 0x1d8   :  { %1005 = vrcp.f32 %v1346_v14  ;;  %v1407_v58 = vadd.f32 1.0, %v1002_v39  ;;  %vm589_vm8 = vcmp.eq.f32.partialorder %v588_v6, 8.507059e+37  ;;  %vm600_vm10 = vweird.f32 %v1374_v30 }
 0x1d9   :  { %v596_v1 = vsub.f32 1.0, %v595_v48  ;;  %v1479_v39 = vadd.s32 4294967176, %v1308_v55  ;;  %v606_v48 = vor.u32 1.1754944e-38, %v605_v27  ;;  %v1498_v57 = vadd.s32 4294967232, %v1308_v55 }
 0x1da   :  { %v419_v3 = vpop.xlane.xlu1 %418  ;;  %vm1510_vm15 = vcmp.eq.f32.partialorder %v618_v43, 8.507059e+37  ;;  %v633_v10 = vand.u32 2147483647, %v1378_v35  ;;  %vm749_vm3 = vweird.f32 %v1407_v58  ;;  %vm629_vm5 = vweird.f32 %v1378_v35 }
 0x1db   :  { %v448_v12 = vadd.f32 %v1267_v5, %v419_v3  ;;  %v583_v3 = vadd.f32 %v1324_v4, %v582_v53  ;;  %v597_v15 = vmul.f32 %v1374_v30, %v596_v1 }
 0x1dd   :  { %v882_v21 = vmul.f32 -1.442695, %v448_v12  ;;  %v1004_v46 = vpop.eup %1003  ;;  %v783_v12 = vperm.slane %v562_v60, %v1336_v9  ;;  %v587_v18 = vsel %vm1441_vm7, %v1324_v4, %v583_v3  ;;  %v1462_v4 = vadd.s32 4294967240, %v1308_v55 }
 0x1de   :  { %v1403_v54 = vpop.eup %1005  ;;  %v1420_v0 = vadd.f32 1.0, %v1004_v46  ;;  %v592_v31 = vsel %vm589_vm8, %v591_v24, %v587_v18  ;;  %v598_v33 = vadd.f32 %v1374_v30, %v597_v15  ;;  %vm1556_vm7 = vcmp.eq.f32.partialorder %v633_v10, 8.507059e+37 }
 0x1df   :  { %1007 = vpow2.f32 %v882_v21  ;;  %v610_v7 = vmul.f32 %v1403_v54, %v1346_v14  ;;  %v785_v26 = vsel %vm784_vm12, %v783_v12, %v781_v49  ;;  %v791_v47 = vperm.slane %v592_v31, %v1366_v25  ;;  %vm1487_vm12 = vmor %vm599_vm9, %vm600_vm10 }
 0x1e0   :  { %1009 = vrcp.f32 %v1378_v35  ;;  %v789_v41 = vsel %vm788_vm1, %v787_v23, %v785_v26  ;;  %v602_v56 = vsel %vm1487_vm12, %v1374_v30, %v598_v33  ;;  %vm615_vm13 = vweird.f32 %v1403_v54 }
 0x1e1   :  { %v611_v19 = vsub.f32 1.0, %v610_v7  ;;  %v793_v32 = vsel %vm792_vm6, %v791_v47, %v789_v41  ;;  %v607_v3 = vsel %vm1471_vm11, %v606_v48, %v602_v56  ;;  %vm800_vm1 = vcmask 458112   ;;  %vm1521_vm2 = vmor %vm614_vm14, %vm615_vm13 }
 0x1e2   :  { %v421_v36 = vpop.xlane.xlu2 %420  ;;  %v753_v7 = vand.u32 2147483647, %v1407_v58  ;;  %v795_v40 = vperm.slane %v607_v3, %v1418_v63  ;;  %vm804_vm9 = vcmask 523712   ;;  %v650_v43 = vand.u32 2147483648, %v1420_v0 }
 0x1e3   :  { %v449_v38 = vadd.f32 %v1267_v5, %v421_v36  ;;  %v612_v37 = vmul.f32 %v1403_v54, %v611_v19  ;;  %vm644_vm12 = vweird.f32 %v1420_v0  ;;  %v1601_v30 = vadd.s32 4294967216, %v1308_v55 }
 0x1e4   :  { %vm1579_vm11 = vcmp.eq.f32.partialorder %v753_v7, 8.507059e+37  ;;  %v826_v56 = vadd.s32 4294967192, %v1308_v55 }
 0x1e5   :  { %v883_v50 = vmul.f32 -1.442695, %v449_v38  ;;  %v1008_v2 = vpop.eup %1007  ;;  %v613_v61 = vadd.f32 %v1403_v54, %v612_v37 }
 0x1e6   :  { %v1434_v11 = vpop.eup %1009  ;;  %v1449_v17 = vadd.f32 1.0, %v1008_v2 }
 0x1e7   :  { %1011 = vpow2.f32 %v883_v50  ;;  %v625_v21 = vmul.f32 %v1434_v11, %v1378_v35  ;;  %v620_v50 = vand.u32 2147483648, %v1346_v14  ;;  %v617_v49 = vsel %vm1521_vm2, %v1403_v54, %v613_v61 }
 0x1e8   :  { %1013 = vrcp.f32 %v1407_v58  ;;  %vm630_vm4 = vweird.f32 %v1434_v11  ;;  %v663_v61 = vand.u32 2147483647, %v1449_v17 }
 0x1e9   :  { %1015 = vrcp.f32 %v1420_v0  ;;  %v626_v44 = vsub.f32 1.0, %v625_v21  ;;  %v621_v1 = vor.u32 1.1754944e-38, %v620_v50  ;;  %vm1552_vm6 = vmor %vm629_vm5, %vm630_vm4  ;;  %v797_v50 = vsel %vm796_vm0, %v795_v40, %v793_v32 }
 0x1ea   :  { %v423_v8 = vpop.xlane.xlu1 %422  ;;  %vm1627_vm2 = vcmp.eq.f32.partialorder %v663_v61, 8.507059e+37 }
 0x1eb   :  { %v450_v45 = vadd.f32 %v1267_v5, %v423_v8  ;;  %v627_v60 = vmul.f32 %v1434_v11, %v626_v44  ;;  %v755_v8 = vand.u32 2147483648, %v1407_v58  ;;  %v622_v24 = vsel %vm1510_vm15, %v621_v1, %v617_v49 }
 0x1ec   :  { %v799_v41 = vperm.slane %v622_v24, %v1447_v16  ;;  %v651_v1 = vor.u32 1.1754944e-38, %v650_v43 }
 0x1ed   :  { %v884_v9 = vmul.f32 -1.442695, %v450_v45  ;;  %v1012_v22 = vpop.eup %1011  ;;  %v635_v45 = vand.u32 2147483648, %v1378_v35  ;;  %v628_v15 = vadd.f32 %v1434_v11, %v627_v60  ;;  %v756_v48 = vor.u32 1.1754944e-38, %v755_v8 }
 0x1ee   :  { %v1464_v29 = vpop.eup %1013  ;;  %v1476_v34 = vadd.f32 1.0, %v1012_v22  ;;  %v1545_v22 = vadd.s32 4294967224, %v1308_v55 }
 0x1ef   :  { %1017 = vpow2.f32 %v884_v9  ;;  %v1469_v20 = vpop.eup %1015  ;;  %v745_v51 = vmul.f32 %v1464_v29, %v1407_v58  ;;  %vm750_vm8 = vweird.f32 %v1464_v29  ;;  %v632_v36 = vsel %vm1552_vm6, %v1434_v11, %v628_v15 }
 0x1f0   :  { %1019 = vrcp.f32 %v1449_v17  ;;  %v640_v59 = vmul.f32 %v1469_v20, %v1420_v0  ;;  %v636_v37 = vor.u32 1.1754944e-38, %v635_v45  ;;  %vm645_vm10 = vweird.f32 %v1469_v20  ;;  %vm1590_vm13 = vmor %vm749_vm3, %vm750_vm8 }
 0x1f1   :  { %1021 = vrcp.f32 %v1476_v34  ;;  %v746_v2 = vsub.f32 1.0, %v745_v51  ;;  %v648_v51 = vand.u32 2147483647, %v1420_v0  ;;  %vm1595_vm14 = vmor %vm644_vm12, %vm645_vm10  ;;  %vm674_vm5 = vweird.f32 %v1476_v34 }
 0x1f2   :  { %v425_v38 = vpop.xlane.xlu2 %424  ;;  %v641_v6 = vsub.f32 1.0, %v640_v59  ;;  %v637_v47 = vsel %vm1556_vm7, %v636_v37, %v632_v36  ;;  %v801_v59 = vsel %vm800_vm1, %v799_v41, %v797_v50  ;;  %vm659_vm1 = vweird.f32 %v1449_v17 }
 0x1f3   :  { %v451_v46 = vadd.f32 %v1267_v5, %v425_v38  ;;  %v747_v19 = vmul.f32 %v1464_v29, %v746_v2  ;;  %v803_v60 = vperm.slane %v637_v47, %v1462_v4  ;;  %vm649_vm0 = vcmp.eq.f32.partialorder %v648_v51, 8.507059e+37 }
 0x1f4   :  { %v642_v21 = vmul.f32 %v1469_v20, %v641_v6  ;;  %v665_v6 = vand.u32 2147483648, %v1449_v17  ;;  %vm808_vm10 = vcmask 589312   ;;  %v1675_v37 = vadd.s32 4294967200, %v1308_v55 }
 0x1f5   :  { %v1018_v53 = vpop.eup %1017  ;;  %v885_v25 = vmul.f32 -1.442695, %v451_v46  ;;  %v748_v44 = vadd.f32 %v1464_v29, %v747_v19  ;;  %v1645_v40 = vsel %vm804_vm9, %v803_v60, %v801_v59  ;;  %vm812_vm12 = vcmask 654912  }
 0x1f6   :  { %v1505_v42 = vadd.f32 1.0, %v1018_v53  ;;  %v1507_v62 = vpop.eup %1019  ;;  %v643_v46 = vadd.f32 %v1469_v20, %v642_v21  ;;  %v1656_v21 = vadd.s32 4294967208, %v1308_v55 }
 0x1f7   :  { %1023 = vpow2.f32 %v885_v25  ;;  %v655_v12 = vmul.f32 %v1507_v62, %v1449_v17  ;;  %v1539_v54 = vpop.eup %1021  ;;  %v752_v0 = vsel %vm1590_vm13, %v1464_v29, %v748_v44  ;;  %vm660_vm15 = vweird.f32 %v1507_v62 }
 0x1f8   :  { %1025 = vrcp.f32 %v1505_v42  ;;  %v670_v38 = vmul.f32 %v1539_v54, %v1476_v34  ;;  %v647_v32 = vsel %vm1595_vm14, %v1469_v20, %v643_v46  ;;  %v1622_v20 = vsel %vm1579_vm11, %v756_v48, %v752_v0  ;;  %vm1632_vm3 = vmor %vm659_vm1, %vm660_vm15 }
 0x1f9   :  { %v656_v35 = vsub.f32 1.0, %v655_v12  ;;  %v1624_v49 = vsel %vm649_vm0, %v651_v1, %v647_v32  ;;  %v678_v12 = vand.u32 2147483647, %v1476_v34  ;;  %vm675_vm4 = vweird.f32 %v1539_v54 }
 0x1fa   :  { %v429_v13 = vpop.xlane.xlu2 %428  ;;  %v427_v52 = vpop.xlane.xlu1 %426  ;;  %v671_v53 = vsub.f32 1.0, %v670_v38  ;;  %v807_v24 = vperm.slane %v1624_v49, %v1498_v57  ;;  %vm1668_vm8 = vmor %vm674_vm5, %vm675_vm4  ;;  %vm689_vm9 = vweird.f32 %v1505_v42  ;;  %v695_v36 = vand.u32 2147483648, %v1505_v42 }
 0x1fb   :  { %v453_v9 = vadd.f32 %v1267_v5, %v429_v13  ;;  %v452_v18 = vadd.f32 %v1267_v5, %v427_v52  ;;  %v657_v28 = vmul.f32 %v1507_v62, %v656_v35  ;;  %vm1662_vm6 = vcmp.eq.f32.partialorder %v678_v12, 8.507059e+37 }
 0x1fc   :  { %v672_v4 = vmul.f32 %v1539_v54, %v671_v53  ;;  %vm816_vm15 = vcmask 720512   ;;  %v696_v50 = vor.u32 1.1754944e-38, %v695_v36  ;;  %v809_v45 = vsel %vm808_vm10, %v807_v24, %v1645_v40 }
 0x1fd   :  { %v1024_v23 = vpop.eup %1023  ;;  %v887_v26 = vmul.f32 -1.442695, %v453_v9  ;;  %v886_v27 = vmul.f32 -1.442695, %v452_v18  ;;  %v658_v14 = vadd.f32 %v1507_v62, %v657_v28  ;;  %v666_v9 = vor.u32 1.1754944e-38, %v665_v6 }
 0x1fe   :  { %v1550_v5 = vpop.eup %1025  ;;  %v1560_v33 = vadd.f32 1.0, %v1024_v23  ;;  %v680_v18 = vand.u32 2147483648, %v1476_v34  ;;  %v673_v19 = vadd.f32 %v1539_v54, %v672_v4  ;;  %vm836_vm10 = vcmask 1048512  }
 0x1ff   :  { %1027 = vpow2.f32 %v887_v26  ;;  %v685_v11 = vmul.f32 %v1550_v5, %v1505_v42  ;;  %v662_v17 = vsel %vm1632_vm3, %v1507_v62, %v658_v14  ;;  %v693_v62 = vand.u32 2147483647, %v1505_v42 }
 0x200   :  { %1029 = vrcp.f32 %v1560_v33  ;;  %v1660_v26 = vsel %vm1627_vm2, %v666_v9, %v662_v17  ;;  %vm690_vm7 = vweird.f32 %v1550_v5  ;;  %v681_v35 = vor.u32 1.1754944e-38, %v680_v18 }
 0x201   :  { %1031 = vpow2.f32 %v886_v27  ;;  %v686_v2 = vsub.f32 1.0, %v685_v11  ;;  %v677_v38 = vsel %vm1668_vm8, %v1539_v54, %v673_v19  ;;  %v811_v44 = vperm.slane %v1660_v26, %v1545_v22  ;;  %vm1685_vm13 = vmor %vm689_vm9, %vm690_vm7 }
 0x202   :  { %vm1689_vm14 = vcmp.eq.f32.partialorder %v693_v62, 8.507059e+37  ;;  %v708_v54 = vand.u32 2147483647, %v1560_v33  ;;  %v710_v11 = vand.u32 2147483648, %v1560_v33  ;;  %vm704_vm0 = vweird.f32 %v1560_v33 }
 0x203   :  { %v687_v13 = vmul.f32 %v1550_v5, %v686_v2  ;;  %v682_v48 = vsel %vm1662_vm6, %v681_v35, %v677_v38  ;;  %v835_v18 = vperm.slane %v1622_v20, %v1479_v39 }
 0x204   :  { %vm709_vm3 = vcmp.eq.f32.partialorder %v708_v54, 8.507059e+37  ;;  %v711_v61 = vor.u32 1.1754944e-38, %v710_v11  ;;  %v815_v14 = vperm.slane %v682_v48, %v1601_v30 }
 0x205   :  { %v1028_v58 = vpop.eup %1027  ;;  %v688_v31 = vadd.f32 %v1550_v5, %v687_v13 }
 0x206   :  { %v1610_v3 = vpop.eup %1029  ;;  %v1615_v7 = vadd.f32 1.0, %v1028_v58 }
 0x207   :  { %v1032_v29 = vpop.eup %1031  ;;  %v700_v8 = vmul.f32 %v1610_v3, %v1560_v33  ;;  %vm705_vm11 = vweird.f32 %v1610_v3  ;;  %v692_v28 = vsel %vm1685_vm13, %v1550_v5, %v688_v31 }
 0x208   :  { %1033 = vrcp.f32 %v1615_v7  ;;  %v1638_v15 = vadd.f32 1.0, %v1032_v29  ;;  %v740_v16 = vand.u32 2147483648, %v1615_v7  ;;  %vm1704_vm1 = vmor %vm704_vm0, %vm705_vm11  ;;  %v738_v59 = vand.u32 2147483647, %v1615_v7 }
 0x209   :  { %v701_v52 = vsub.f32 1.0, %v700_v8  ;;  %v697_v25 = vsel %vm1689_vm14, %v696_v50, %v692_v28  ;;  %vm734_vm4 = vweird.f32 %v1615_v7  ;;  %v830_v29 = vadd.s32 4294967184, %v1308_v55 }
 0x20a   :  { %1035 = vrcp.f32 %v1638_v15  ;;  %v741_v58 = vor.u32 1.1754944e-38, %v740_v16  ;;  %v725_v60 = vand.u32 2147483648, %v1638_v15  ;;  %v723_v2 = vand.u32 2147483647, %v1638_v15 }
 0x20b   :  { %v702_v23 = vmul.f32 %v1610_v3, %v701_v52  ;;  %vm739_vm7 = vcmp.eq.f32.partialorder %v738_v59, 8.507059e+37  ;;  %vm719_vm8 = vweird.f32 %v1638_v15  ;;  %v819_v8 = vperm.slane %v697_v25, %v1656_v21 }
 0x20c   :  { %v726_v10 = vor.u32 1.1754944e-38, %v725_v60  ;;  %vm820_vm11 = vcmask 786112   ;;  %vm724_vm13 = vcmp.eq.f32.partialorder %v723_v2, 8.507059e+37  ;;  %v813_v55 = vsel %vm812_vm12, %v811_v44, %v809_v45 }
 0x20d   :  { %v703_v41 = vadd.f32 %v1610_v3, %v702_v23  ;;  %vm824_vm14 = vcmask 851712   ;;  %v817_v52 = vsel %vm816_vm15, %v815_v14, %v813_v55  ;;  %vm828_vm0 = vcmask 917312  }
 0x20e   :  { %v1034_v63 = vpop.eup %1033  ;;  %v821_v17 = vsel %vm820_vm11, %v819_v8, %v817_v52 }
 0x20f   :  { %v730_v43 = vmul.f32 %v1034_v63, %v1615_v7  ;;  %v707_v33 = vsel %vm1704_vm1, %v1610_v3, %v703_v41  ;;  %vm735_vm2 = vweird.f32 %v1034_v63  ;;  %vm832_vm1 = vcmask 982912  }
 0x210   :  { %v1036_v47 = vpop.eup %1035  ;;  %v712_v3 = vsel %vm709_vm3, %v711_v61, %v707_v33  ;;  %vm736_vm6 = vmor %vm734_vm4, %vm735_vm2 }
 0x211   :  { %v731_v22 = vsub.f32 1.0, %v730_v43  ;;  %v715_v53 = vmul.f32 %v1036_v47, %v1638_v15  ;;  %vm720_vm5 = vweird.f32 %v1036_v47  ;;  %v823_v30 = vperm.slane %v712_v3, %v1675_v37 }
 0x212   :  { %vm721_vm9 = vmor %vm719_vm8, %vm720_vm5 }
 0x213   :  { %v732_v5 = vmul.f32 %v1034_v63, %v731_v22  ;;  %v716_v0 = vsub.f32 1.0, %v715_v53  ;;  %v825_v57 = vsel %vm824_vm14, %v823_v30, %v821_v17 }
 0x215   :  { %v733_v32 = vadd.f32 %v1034_v63, %v732_v5  ;;  %v717_v1 = vmul.f32 %v1036_v47, %v716_v0 }
 0x217   :  { %v737_v6 = vsel %vm736_vm6, %v1034_v63, %v733_v32  ;;  %v718_v4 = vadd.f32 %v1036_v47, %v717_v1 }
 0x218   :  { %v742_v7 = vsel %vm739_vm7, %v741_v58, %v737_v6 }
 0x219   :  { %v722_v12 = vsel %vm721_vm9, %v1036_v47, %v718_v4  ;;  %v831_v15 = vperm.slane %v742_v7, %v830_v29 }
 0x21a   :  { %v727_v13 = vsel %vm724_vm13, %v726_v10, %v722_v12 }
 0x21b   :  { %v827_v9 = vperm.slane %v727_v13, %v826_v56 }
 0x21d   :  { %v829_v49 = vsel %vm828_vm0, %v827_v9, %v825_v57 }
 0x21e   :  { %v833_v40 = vsel %vm832_vm1, %v831_v15, %v829_v49 }
 0x21f   :  { %v837_v19 = vsel %vm836_vm10, %v835_v18, %v833_v40 }
 0x220   :  { %839 = vst [vmem:[#allocation6] sm:$0x1] %v837_v19 }
 0x221   :  { %850 = dma.vmem_to_hbm [thread:$0]  %s846_s5, 16, %s848_s3, [#allocation5]  }
 0x222   :  { %1087 = dma.done.wait [#allocation5], 16  }
 0x223   :  { %1088 = vsyncadd [#allocation5], 4294967280 }
 0x224   :  { %855 = vsyncpa [#allocation4], 1 }
 0x225   :  { %856 = vsyncpa [#allocation5], 1 }

</bundles_post_ra>
